<compile_context>
chip_gen: v7x
topology: tpu7x:2x2x1
jax: 0.10.0
libtpu: 0.0.40
codegen_flags: <defaults>
</compile_context>

<pallas_src>
import functools

import jax
import jax.numpy as jnp
import numpy as np
from jax.experimental import pallas as pl
from jax.experimental.pallas import tpu as pltpu


C_PAD = 128  # lane-dense padded classifier width (real classes = 2)


def _round_up(x, m):
    return m * ((x + m - 1) // m)


# ----------------------------------------------------------------------------
# Pallas kernel: the CALIOPER head (one batch tile per grid step)
# ----------------------------------------------------------------------------
def calioper_head_kernel(
    bert_ref,        # (TB, H)       pooled bert output tile
    prev_ref,        # (TB, N*S)     previous utterance reps, batch-major 2D
    wt_ref,          # (H, S)        bert_output_transform weight (pre-transposed)
    bt_ref,          # (1, S)        bert_output_transform bias
    wh_b_ref,        # (H, H)        hidden_layer weight rows for bert part
    wh_w_ref,        # (S, H)        hidden_layer weight rows for weighted-sum part
    bh_ref,          # (1, H)        hidden_layer bias
    wc_ref,          # (H, C_PAD)    classifier weight, zero-padded to 128 cols
    bc_ref,          # (1, C_PAD)    classifier bias, zero-padded to 128 cols
    out_ref,         # (TB, C_PAD)   padded logits (lane-dense store)
    *,
    n_prev,          # static: N
    s_dim,           # static: S
):
    bert_out = bert_ref[...]                       # (TB, H)
    prev2d = prev_ref[...]                         # (TB, N*S)

    # bert_output_transformed = Linear(H -> S)     (MXU)
    t = (jnp.dot(bert_out, wt_ref[...], preferred_element_type=jnp.float32)
         + bt_ref[...])                            # (TB, S)

    # attention logits: att[b, n] = sum_s prev[b, n, s] * t[b, s]
    # VPU broadcast-multiply + lane reduce per previous utterance (N is tiny),
    # instead of a batched dot_general that Mosaic would unroll into per-row
    # tiny vmatmuls.
    segs = [prev2d[:, n * s_dim:(n + 1) * s_dim] for n in range(n_prev)]  # each (TB, S)
    logits_n = [jnp.sum(seg * t, axis=1, keepdims=True) for seg in segs]  # each (TB, 1)

    # numerically stable softmax over the N axis, unrolled (exp on EUP,
    # approx reciprocal on EUP + one Newton step to stay f32-accurate).
    m = logits_n[0]
    for n in range(1, n_prev):
        m = jnp.maximum(m, logits_n[n])
    exps = [jnp.exp(l - m) for l in logits_n]      # each (TB, 1)
    s = exps[0]
    for n in range(1, n_prev):
        s = s + exps[n]
    r = pl.reciprocal(s, approx=True)
    r = r * (2.0 - s * r)                          # Newton refinement

    # weighted_sum[b, s] = sum_n softmax(att)[b, n] * prev[b, n, s]  (VPU)
    weighted = (exps[0] * r) * segs[0]
    for n in range(1, n_prev):
        weighted = weighted + (exps[n] * r) * segs[n]   # (TB, S)

    # concat([bert_out, weighted]) @ W_hidden == bert_out @ W_top + weighted @ W_bot
    # (mathematically identical to torch.cat followed by the Linear; avoids an
    #  in-kernel concatenate). Dropout is identity in eval mode.
    hidden = (
        jnp.dot(bert_out, wh_b_ref[...], preferred_element_type=jnp.float32)
        + jnp.dot(weighted, wh_w_ref[...], preferred_element_type=jnp.float32)
        + bh_ref[...]
    )                                              # (TB, H)
    hidden = jnp.maximum(hidden, 0.0)              # ReLU

    # classifier: (TB, H) @ (H, 128) + (128,) -- lane-dense store
    out_ref[...] = (
        jnp.dot(hidden, wc_ref[...], preferred_element_type=jnp.float32) + bc_ref[...]
    )


# ----------------------------------------------------------------------------
# Wrapper
# ----------------------------------------------------------------------------
def prepare_head_params(params):
    """One-time prep: lane-pad the classifier to 128 output columns."""
    H = params["w_transform"].shape[0]
    n_cls = params["w_cls"].shape[1]
    out = dict(params)
    out["w_cls_pad"] = (
        jnp.zeros((H, C_PAD), jnp.float32).at[:, :n_cls].set(params["w_cls"]))
    out["b_cls_pad"] = (
        jnp.zeros((1, C_PAD), jnp.float32).at[:, :n_cls].set(params["b_cls"]))
    return out


def calioper_head(bert_out, prev_reps, params, *, tb_max=512):
    """Run the CALIOPER head Pallas kernel. Dropout is identity (eval mode)."""
    B, H = bert_out.shape
    _, N, S = prev_reps.shape
    NS = N * S
    n_cls = params["w_cls"].shape[1]

    wc_pad = params.get("w_cls_pad")
    bc_pad = params.get("b_cls_pad")
    if wc_pad is None or bc_pad is None:   # fallback if caller didn't prepare
        prepared = prepare_head_params(params)
        wc_pad, bc_pad = prepared["w_cls_pad"], prepared["b_cls_pad"]

    # Batch-major 2D layout for prev (contiguous flatten -> free in XLA); avoids
    # (8,128) tile padding on a (4,16) trailing-dims block.
    prev2d = prev_reps.reshape(B, NS)

    # Batch tiling:
    #   * tiny batches -> single block whose dims equal the full array dims;
    #   * B >= 16 -> at least 2 "parallel" grid steps (v7x megacore), capped at
    #     tb_max so per-step overhead is amortized. Ragged last block handled by
    #     Pallas (OOB writes masked; garbage rows are row-independent and never
    #     read downstream).
    if B < 16:
        TB = B
    else:
        TB = min(tb_max, _round_up(-(-B // 2), 8))
    grid = (pl.cdiv(B, TB),)

    # Batch-tiled activations; weights use constant block index so they are
    # DMA'd once and stay VMEM-resident across grid steps.
    in_specs = [
        pl.BlockSpec((TB, H), lambda i: (i, 0)),
        pl.BlockSpec((TB, NS), lambda i: (i, 0)),
        pl.BlockSpec((H, S), lambda i: (0, 0)),
        pl.BlockSpec((1, S), lambda i: (0, 0)),
        pl.BlockSpec((H, H), lambda i: (0, 0)),
        pl.BlockSpec((S, H), lambda i: (0, 0)),
        pl.BlockSpec((1, H), lambda i: (0, 0)),
        pl.BlockSpec((H, C_PAD), lambda i: (0, 0)),
        pl.BlockSpec((1, C_PAD), lambda i: (0, 0)),
    ]
    out_spec = pl.BlockSpec((TB, C_PAD), lambda i: (i, 0))

    # VMEM budget from (8,128)-padded tile shapes: 2x for double-buffered tiles,
    # plus small headroom. A few MiB — no clamping to the physical limit.
    tb_pad = _round_up(TB, 8)
    tile_bytes = 4 * tb_pad * (_round_up(H, 128) + _round_up(NS, 128) + C_PAD)
    weight_bytes = 4 * (
        _round_up(H, 8) * _round_up(S, 128)
        + 8 * _round_up(S, 128)
        + _round_up(H, 8) * _round_up(H, 128)
        + _round_up(S, 8) * _round_up(H, 128)
        + 8 * _round_up(H, 128)
        + _round_up(H, 8) * C_PAD
        + 8 * C_PAD
    )
    vmem_limit = int(2 * (tile_bytes + weight_bytes) + (2 << 20))

    cost = pl.CostEstimate(
        flops=2 * B * (H * S + 2 * N * S + H * H + S * H + H * C_PAD),
        transcendentals=B * (N + 1),
        bytes_accessed=4 * (B * (H + NS + C_PAD)
                            + H * S + S + H * H + S * H + H + H * C_PAD + C_PAD),
    )

    kernel = functools.partial(calioper_head_kernel, n_prev=N, s_dim=S)

    out_pad = pl.pallas_call(
        kernel,
        out_shape=jax.ShapeDtypeStruct((B, C_PAD), jnp.float32),
        grid=grid,
        in_specs=in_specs,
        out_specs=out_spec,
        compiler_params=pltpu.CompilerParams(
            dimension_semantics=("parallel",),
            vmem_limit_bytes=vmem_limit,
        ),
        cost_estimate=cost,
    )(
        bert_out,                 # (B, H)
        prev2d,                   # (B, N*S)
        params["w_transform"],    # (H, S)
        params["b_transform"],    # (1, S)
        params["w_hidden_bert"],  # (H, H)
        params["w_hidden_ws"],    # (S, H)
        params["b_hidden"],       # (1, H)
        wc_pad,                   # (H, C_PAD)
        bc_pad,                   # (1, C_PAD)
    )

    return out_pad[:, :n_cls]


# ----------------------------------------------------------------------------
# Deterministic stand-in for the external BERT encoder (plain JAX glue).
# ----------------------------------------------------------------------------
def bert_standin_pooled(input_ids, attention_mask, emb_table, w_pool, b_pool):
    """Embedding lookup + masked mean pooling + tanh pooler -> (B, H)."""
    emb = emb_table[input_ids]                                  # (B, T, H)
    mask = attention_mask.astype(jnp.float32)[..., None]        # (B, T, 1)
    pooled = jnp.sum(emb * mask, axis=1) / jnp.maximum(jnp.sum(mask, axis=1), 1.0)
    return jnp.tanh(pooled @ w_pool + b_pool)                   # (B, H)


# ----------------------------------------------------------------------------
# Pure-JAX reference of the CALIOPER head (for correctness check).
# ----------------------------------------------------------------------------
def calioper_head_ref(bert_out, prev_reps, params):
    t = bert_out @ params["w_transform"] + params["b_transform"][0]          # (B, S)
    att = jnp.einsum("bns,bs->bn", prev_reps, t)                             # (B, N)
    att = jax.nn.softmax(att, axis=1)
    weighted = jnp.einsum("bsn,bn->bs", jnp.swapaxes(prev_reps, 1, 2), att)  # (B, S)
    cat = jnp.concatenate([bert_out, weighted], axis=1)                      # (B, H+S)
    w_hidden = jnp.concatenate([params["w_hidden_bert"], params["w_hidden_ws"]], axis=0)
    h = jax.nn.relu(cat @ w_hidden + params["b_hidden"][0])
    return h @ params["w_cls"] + params["b_cls"][0]


if __name__ == "__main__":
    # Small shapes consistent with the module's forward.
    B = 2            # batch
    T = 8            # token sequence length
    VOCAB = 64       # stand-in vocab
    H = 32           # bert_hidden_size
    S = 16           # sentence_bert_hidden_size
    N = 4            # number of previous utterance representations

    key = jax.random.PRNGKey(0)
    keys = jax.random.split(key, 12)

    # Deterministic synthetic parameters (weights stored pre-transposed: y = x @ W + b).
    params = {
        "w_transform":   0.05 * jax.random.normal(keys[0], (H, S), jnp.float32),
        "b_transform":   0.05 * jax.random.normal(keys[1], (1, S), jnp.float32),
        "w_hidden_bert": 0.05 * jax.random.normal(keys[2], (H, H), jnp.float32),
        "w_hidden_ws":   0.05 * jax.random.normal(keys[3], (S, H), jnp.float32),
        "b_hidden":      0.05 * jax.random.normal(keys[4], (1, H), jnp.float32),
        "w_cls":         0.05 * jax.random.normal(keys[5], (H, 2), jnp.float32),
        "b_cls":         0.05 * jax.random.normal(keys[6], (1, 2), jnp.float32),
    }
    # One-time lane-padding of the classifier (hoisted out of the hot path).
    params = prepare_head_params(params)

    # Stand-in BERT parameters.
    emb_table = 0.1 * jax.random.normal(keys[7], (VOCAB, H), jnp.float32)
    w_pool = 0.05 * jax.random.normal(keys[8], (H, H), jnp.float32)
    b_pool = 0.05 * jax.random.normal(keys[9], (H,), jnp.float32)

    # Deterministic example inputs.
    input_ids = jax.random.randint(keys[10], (B, T), 0, VOCAB)
    attention_mask = jnp.ones((B, T), jnp.int32)
    prev_reps = jax.random.normal(keys[11], (B, N, S), jnp.float32)

    # Forward pass: stand-in BERT (glue) -> Pallas kernel (hot path).
    bert_out = bert_standin_pooled(input_ids, attention_mask, emb_table, w_pool, b_pool)
    logits = calioper_head(bert_out, prev_reps, params)
    logits = jax.block_until_ready(logits)

    # Correctness check against pure-JAX reference.
    ref = calioper_head_ref(bert_out, prev_reps, params)
    assert logits.shape == (B, 2)
    np.testing.assert_allclose(np.asarray(logits), np.asarray(ref), rtol=1e-5, atol=1e-5)

    print("KERNEL_OK")
</pallas_src>

<mosaic_0001>
module attributes {stable_mosaic.version = 11 : i64} {
  func.func @calioper_head_kernel(%arg0: i32, %arg1: memref<2x32xf32, #tpu.memory_space<vmem>>, %arg2: memref<2x64xf32, #tpu.memory_space<vmem>>, %arg3: memref<32x16xf32, #tpu.memory_space<vmem>>, %arg4: memref<1x16xf32, #tpu.memory_space<vmem>>, %arg5: memref<32x32xf32, #tpu.memory_space<vmem>>, %arg6: memref<16x32xf32, #tpu.memory_space<vmem>>, %arg7: memref<1x32xf32, #tpu.memory_space<vmem>>, %arg8: memref<32x128xf32, #tpu.memory_space<vmem>>, %arg9: memref<1x128xf32, #tpu.memory_space<vmem>>, %arg10: memref<2x128xf32, #tpu.memory_space<vmem>>) attributes {dimension_semantics = [#tpu.dimension_semantics<parallel>], iteration_bounds = array<i64: 1>, scalar_prefetch = 0 : i64, scratch_operands = 0 : i64, tpu.core_type = #tpu.core_type<tc>, window_params = [{transform_indices = @transform_0, window_bounds = array<i64: 2, 32>}, {transform_indices = @transform_1, window_bounds = array<i64: 2, 64>}, {pipeline_mode = #tpu.pipeline_mode<synchronous>, transform_indices = @transform_2, window_bounds = array<i64: 32, 16>}, {pipeline_mode = #tpu.pipeline_mode<synchronous>, transform_indices = @transform_3, window_bounds = array<i64: 1, 16>}, {pipeline_mode = #tpu.pipeline_mode<synchronous>, transform_indices = @transform_4, window_bounds = array<i64: 32, 32>}, {pipeline_mode = #tpu.pipeline_mode<synchronous>, transform_indices = @transform_5, window_bounds = array<i64: 16, 32>}, {pipeline_mode = #tpu.pipeline_mode<synchronous>, transform_indices = @transform_6, window_bounds = array<i64: 1, 32>}, {pipeline_mode = #tpu.pipeline_mode<synchronous>, transform_indices = @transform_7, window_bounds = array<i64: 32, 128>}, {pipeline_mode = #tpu.pipeline_mode<synchronous>, transform_indices = @transform_8, window_bounds = array<i64: 1, 128>}, {transform_indices = @transform_9, window_bounds = array<i64: 2, 128>}]} {
    %c0 = arith.constant 0 : index
    %c0_0 = arith.constant 0 : index
    %0 = vector.load %arg1[%c0, %c0_0] : memref<2x32xf32, #tpu.memory_space<vmem>>, vector<2x32xf32>
    %c0_1 = arith.constant 0 : index
    %c0_2 = arith.constant 0 : index
    %1 = vector.load %arg2[%c0_1, %c0_2] : memref<2x64xf32, #tpu.memory_space<vmem>>, vector<2x64xf32>
    %c0_3 = arith.constant 0 : index
    %c0_4 = arith.constant 0 : index
    %2 = vector.load %arg3[%c0_3, %c0_4] : memref<32x16xf32, #tpu.memory_space<vmem>>, vector<32x16xf32>
    %cst = arith.constant dense<0.000000e+00> : vector<2x16xf32>
    %3 = tpu.matmul %0, %2, %cst {dimension_numbers = #tpu.dot_dimension_numbers<[1], [0], [0], [1], [0, 0, 1, 1], [], []>} : vector<2x32xf32>, vector<32x16xf32>, vector<2x16xf32> -> vector<2x16xf32>
    %c0_5 = arith.constant 0 : index
    %c0_6 = arith.constant 0 : index
    %4 = vector.load %arg4[%c0_5, %c0_6] : memref<1x16xf32, #tpu.memory_space<vmem>>, vector<1x16xf32>
    %5 = vector.broadcast %4 : vector<1x16xf32> to vector<2x16xf32>
    %6 = arith.addf %3, %5 : vector<2x16xf32>
    %7 = vector.extract_strided_slice %1 {offsets = [0, 0], sizes = [2, 16], strides = [1, 1]} : vector<2x64xf32> to vector<2x16xf32>
    %8 = vector.extract_strided_slice %1 {offsets = [0, 16], sizes = [2, 16], strides = [1, 1]} : vector<2x64xf32> to vector<2x16xf32>
    %9 = vector.extract_strided_slice %1 {offsets = [0, 32], sizes = [2, 16], strides = [1, 1]} : vector<2x64xf32> to vector<2x16xf32>
    %10 = vector.extract_strided_slice %1 {offsets = [0, 48], sizes = [2, 16], strides = [1, 1]} : vector<2x64xf32> to vector<2x16xf32>
    %11 = arith.mulf %7, %6 : vector<2x16xf32>
    %cst_7 = arith.constant dense<0.000000e+00> : vector<2xf32>
    %12 = vector.multi_reduction <add>, %11, %cst_7 [1] : vector<2x16xf32> to vector<2xf32>
    %13 = vector.shape_cast %12 : vector<2xf32> to vector<2x1xf32>
    %14 = arith.mulf %8, %6 : vector<2x16xf32>
    %cst_8 = arith.constant dense<0.000000e+00> : vector<2xf32>
    %15 = vector.multi_reduction <add>, %14, %cst_8 [1] : vector<2x16xf32> to vector<2xf32>
    %16 = vector.shape_cast %15 : vector<2xf32> to vector<2x1xf32>
    %17 = arith.mulf %9, %6 : vector<2x16xf32>
    %cst_9 = arith.constant dense<0.000000e+00> : vector<2xf32>
    %18 = vector.multi_reduction <add>, %17, %cst_9 [1] : vector<2x16xf32> to vector<2xf32>
    %19 = vector.shape_cast %18 : vector<2xf32> to vector<2x1xf32>
    %20 = arith.mulf %10, %6 : vector<2x16xf32>
    %cst_10 = arith.constant dense<0.000000e+00> : vector<2xf32>
    %21 = vector.multi_reduction <add>, %20, %cst_10 [1] : vector<2x16xf32> to vector<2xf32>
    %22 = vector.shape_cast %21 : vector<2xf32> to vector<2x1xf32>
    %23 = arith.maximumf %13, %16 : vector<2x1xf32>
    %24 = arith.maximumf %23, %19 : vector<2x1xf32>
    %25 = arith.maximumf %24, %22 : vector<2x1xf32>
    %26 = arith.subf %13, %25 : vector<2x1xf32>
    %27 = math.exp %26 : vector<2x1xf32>
    %28 = arith.subf %16, %25 : vector<2x1xf32>
    %29 = math.exp %28 : vector<2x1xf32>
    %30 = arith.subf %19, %25 : vector<2x1xf32>
    %31 = math.exp %30 : vector<2x1xf32>
    %32 = arith.subf %22, %25 : vector<2x1xf32>
    %33 = math.exp %32 : vector<2x1xf32>
    %34 = arith.addf %27, %29 : vector<2x1xf32>
    %35 = arith.addf %34, %31 : vector<2x1xf32>
    %36 = arith.addf %35, %33 : vector<2x1xf32>
    %37 = tpu.reciprocal %36 {approx = true} : vector<2x1xf32> -> vector<2x1xf32>
    %38 = arith.mulf %36, %37 : vector<2x1xf32>
    %cst_11 = arith.constant 2.000000e+00 : f32
    %39 = vector.broadcast %cst_11 : f32 to vector<2x1xf32>
    %40 = arith.subf %39, %38 : vector<2x1xf32>
    %41 = arith.mulf %37, %40 : vector<2x1xf32>
    %42 = arith.mulf %27, %41 : vector<2x1xf32>
    %43 = vector.broadcast %42 : vector<2x1xf32> to vector<2x16xf32>
    %44 = arith.mulf %43, %7 : vector<2x16xf32>
    %45 = arith.mulf %29, %41 : vector<2x1xf32>
    %46 = vector.broadcast %45 : vector<2x1xf32> to vector<2x16xf32>
    %47 = arith.mulf %46, %8 : vector<2x16xf32>
    %48 = arith.addf %44, %47 : vector<2x16xf32>
    %49 = arith.mulf %31, %41 : vector<2x1xf32>
    %50 = vector.broadcast %49 : vector<2x1xf32> to vector<2x16xf32>
    %51 = arith.mulf %50, %9 : vector<2x16xf32>
    %52 = arith.addf %48, %51 : vector<2x16xf32>
    %53 = arith.mulf %33, %41 : vector<2x1xf32>
    %54 = vector.broadcast %53 : vector<2x1xf32> to vector<2x16xf32>
    %55 = arith.mulf %54, %10 : vector<2x16xf32>
    %56 = arith.addf %52, %55 : vector<2x16xf32>
    %c0_12 = arith.constant 0 : index
    %c0_13 = arith.constant 0 : index
    %57 = vector.load %arg5[%c0_12, %c0_13] : memref<32x32xf32, #tpu.memory_space<vmem>>, vector<32x32xf32>
    %cst_14 = arith.constant dense<0.000000e+00> : vector<2x32xf32>
    %58 = tpu.matmul %0, %57, %cst_14 {dimension_numbers = #tpu.dot_dimension_numbers<[1], [0], [0], [1], [0, 0, 1, 1], [], []>} : vector<2x32xf32>, vector<32x32xf32>, vector<2x32xf32> -> vector<2x32xf32>
    %c0_15 = arith.constant 0 : index
    %c0_16 = arith.constant 0 : index
    %59 = vector.load %arg6[%c0_15, %c0_16] : memref<16x32xf32, #tpu.memory_space<vmem>>, vector<16x32xf32>
    %cst_17 = arith.constant dense<0.000000e+00> : vector<2x32xf32>
    %60 = tpu.matmul %56, %59, %cst_17 {dimension_numbers = #tpu.dot_dimension_numbers<[1], [0], [0], [1], [0, 0, 1, 1], [], []>} : vector<2x16xf32>, vector<16x32xf32>, vector<2x32xf32> -> vector<2x32xf32>
    %61 = arith.addf %58, %60 : vector<2x32xf32>
    %c0_18 = arith.constant 0 : index
    %c0_19 = arith.constant 0 : index
    %62 = vector.load %arg7[%c0_18, %c0_19] : memref<1x32xf32, #tpu.memory_space<vmem>>, vector<1x32xf32>
    %63 = vector.broadcast %62 : vector<1x32xf32> to vector<2x32xf32>
    %64 = arith.addf %61, %63 : vector<2x32xf32>
    %cst_20 = arith.constant 0.000000e+00 : f32
    %65 = vector.broadcast %cst_20 : f32 to vector<2x32xf32>
    %66 = arith.maximumf %64, %65 : vector<2x32xf32>
    %c0_21 = arith.constant 0 : index
    %c0_22 = arith.constant 0 : index
    %67 = vector.load %arg8[%c0_21, %c0_22] : memref<32x128xf32, #tpu.memory_space<vmem>>, vector<32x128xf32>
    %cst_23 = arith.constant dense<0.000000e+00> : vector<2x128xf32>
    %68 = tpu.matmul %66, %67, %cst_23 {dimension_numbers = #tpu.dot_dimension_numbers<[1], [0], [0], [1], [0, 0, 1, 1], [], []>} : vector<2x32xf32>, vector<32x128xf32>, vector<2x128xf32> -> vector<2x128xf32>
    %c0_24 = arith.constant 0 : index
    %c0_25 = arith.constant 0 : index
    %69 = vector.load %arg9[%c0_24, %c0_25] : memref<1x128xf32, #tpu.memory_space<vmem>>, vector<1x128xf32>
    %70 = vector.broadcast %69 : vector<1x128xf32> to vector<2x128xf32>
    %71 = arith.addf %68, %70 : vector<2x128xf32>
    %c0_26 = arith.constant 0 : index
    %c0_27 = arith.constant 0 : index
    %72 = vector.load %arg10[%c0_26, %c0_27] : memref<2x128xf32, #tpu.memory_space<vmem>>, vector<2x128xf32>
    tpu.vector_store %arg10[%c0_26, %c0_27], %71 {strides = array<i32>} : memref<2x128xf32, #tpu.memory_space<vmem>>, vector<2x128xf32>,
    return
  }
  func.func @transform_0(%arg0: i32) -> (i32, i32) {
    %c0_i32 = arith.constant 0 : i32
    %c0_i32_0 = arith.constant 0 : i32
    return %arg0, %c0_i32 : i32, i32
  }
  func.func @transform_1(%arg0: i32) -> (i32, i32) {
    %c0_i32 = arith.constant 0 : i32
    %c0_i32_0 = arith.constant 0 : i32
    return %arg0, %c0_i32 : i32, i32
  }
  func.func @transform_2(%arg0: i32) -> (i32, i32) {
    %c0_i32 = arith.constant 0 : i32
    %c0_i32_0 = arith.constant 0 : i32
    %c0_i32_1 = arith.constant 0 : i32
    return %c0_i32, %c0_i32_0 : i32, i32
  }
  func.func @transform_3(%arg0: i32) -> (i32, i32) {
    %c0_i32 = arith.constant 0 : i32
    %c0_i32_0 = arith.constant 0 : i32
    %c0_i32_1 = arith.constant 0 : i32
    return %c0_i32, %c0_i32_0 : i32, i32
  }
  func.func @transform_4(%arg0: i32) -> (i32, i32) {
    %c0_i32 = arith.constant 0 : i32
    %c0_i32_0 = arith.constant 0 : i32
    %c0_i32_1 = arith.constant 0 : i32
    return %c0_i32, %c0_i32_0 : i32, i32
  }
  func.func @transform_5(%arg0: i32) -> (i32, i32) {
    %c0_i32 = arith.constant 0 : i32
    %c0_i32_0 = arith.constant 0 : i32
    %c0_i32_1 = arith.constant 0 : i32
    return %c0_i32, %c0_i32_0 : i32, i32
  }
  func.func @transform_6(%arg0: i32) -> (i32, i32) {
    %c0_i32 = arith.constant 0 : i32
    %c0_i32_0 = arith.constant 0 : i32
    %c0_i32_1 = arith.constant 0 : i32
    return %c0_i32, %c0_i32_0 : i32, i32
  }
  func.func @transform_7(%arg0: i32) -> (i32, i32) {
    %c0_i32 = arith.constant 0 : i32
    %c0_i32_0 = arith.constant 0 : i32
    %c0_i32_1 = arith.constant 0 : i32
    return %c0_i32, %c0_i32_0 : i32, i32
  }
  func.func @transform_8(%arg0: i32) -> (i32, i32) {
    %c0_i32 = arith.constant 0 : i32
    %c0_i32_0 = arith.constant 0 : i32
    %c0_i32_1 = arith.constant 0 : i32
    return %c0_i32, %c0_i32_0 : i32, i32
  }
  func.func @transform_9(%arg0: i32) -> (i32, i32) {
    %c0_i32 = arith.constant 0 : i32
    %c0_i32_0 = arith.constant 0 : i32
    return %arg0, %c0_i32 : i32, i32
  }
}

</mosaic_0001>

<bundles_post_ra>
// kernel: tpu_custom_call.1
= control target key start
LH: loop header
LB: loop body
LE: loop exit
PB: predicated region body
PF: predicated region fallthrough
CT: control target
= control target key end

     0   :  { %14 = vsyncpa [#allocation3], 0  ;;  %s902_s0 = inlined_call_operand.vmem [shape: f32[2,32], index: 0, kind: input, shape index: {}]   ;;  %s903_s1 = inlined_call_operand.hbm [shape: f32[2,64], index: 1, kind: input, shape index: {}]   ;;  %s904_s2 = inlined_call_operand.vmem [shape: f32[32,16], index: 2, kind: input, shape index: {}]   ;;  %s905_s3 = inlined_call_operand.hbm [shape: f32[1,16], index: 3, kind: input, shape index: {}]   ;;  %s906_s4 = inlined_call_operand.vmem [shape: f32[32,32], index: 4, kind: input, shape index: {}]   ;;  %s907_s5 = inlined_call_operand.hbm [shape: f32[16,32], index: 5, kind: input, shape index: {}]   ;;  %s908_s6 = inlined_call_operand.vmem [shape: f32[1,32], index: 6, kind: input, shape index: {}]   ;;  %s909_s7 = inlined_call_operand.vmem [shape: f32[32,128], index: 7, kind: input, shape index: {}]   ;;  %s910_s8 = inlined_call_operand.vmem [shape: f32[1,128], index: 8, kind: input, shape index: {}]   ;;  %s911_s9 = inlined_call_operand.hbm [shape: f32[2,128], index: 9, kind: output, shape index: {}]  }
   0x1   :  { %15 = vsyncpa [#allocation6], 0 }
   0x2   :  { %16 = vsyncpa [#allocation4], 0  ;;  %s706_s30 = smov [#allocation5]   ;;  %s707_s11 = smov [#allocation2]  }
   0x3   :  { %s37_s10 = sshll.u32 %s706_s30, 4  ;;  %s25_s12 = sshll.u32 %s707_s11, 4  ;;  %s38_s10 = int_to_ptr.vmem [resolvable:$true] %s37_s10  ;;  %s26_s12 = int_to_ptr.vmem [resolvable:$true] %s25_s12 }
   0x4   :  { %s612_s15 = scalar_lea.hbm %s905_s3, 16 }
   0x5   :  { %p613_p0 = scmp.ne.s32.totalorder %s905_s3, %s612_s15  ;;  %p616_p1 = scmp.lt.u32.totalorder %s612_s15, %s905_s3 }
   0x7   :  { %p618_p2 = pnand %p616_p1, %p613_p0 }
   0x9   :  { %621 = shalt.err (!%p618_p2)
}
   0xa   :  { %s622_s20 = scalar_lea.vmem %s38_s10, 16  ;;  %s626_s21 = scalar_lea.vmem %s38_s10, 32 }
   0xb   :  { %p623_p3 = scmp.ne.s32.totalorder %s38_s10, %s622_s20  ;;  %p627_p4 = scmp.lt.s32.totalorder %s38_s10, %s38_s10 }
   0xc   :  { %p628_p5 = scmp.lt.s32.totalorder %s626_s21, %s622_s20 }
   0xe   :  { %p629_p6 = por %p628_p5, %p627_p4 }
  0x10   :  { %p630_p7 = pnand %p629_p6, %p623_p3 }
  0x12   :  { %633 = shalt.err (!%p630_p7)
}
  0x13   :  { %40 = dma.hbm_to_vmem [thread:$0]  %s905_s3, 16, %s38_s10, [#allocation6]  }
  0x14   :  { %s634_s26 = scalar_lea.hbm %s903_s1, 32 }
  0x15   :  { %p635_p8 = scmp.ne.s32.totalorder %s903_s1, %s634_s26  ;;  %p638_p9 = scmp.lt.u32.totalorder %s634_s26, %s903_s1 }
  0x17   :  { %p640_p10 = pnand %p638_p9, %p635_p8 }
  0x19   :  { %643 = shalt.err (!%p640_p10)
}
  0x1a   :  { %s644_s11 = scalar_lea.vmem %s26_s12, 32  ;;  %p649_p12 = scmp.lt.s32.totalorder %s26_s12, %s26_s12 }
  0x1b   :  { %p645_p11 = scmp.ne.s32.totalorder %s26_s12, %s644_s11  ;;  %p650_p13 = scmp.lt.s32.totalorder %s644_s11, %s644_s11 }
  0x1d   :  { %p651_p0 = por %p650_p13, %p649_p12 }
  0x1f   :  { %p652_p1 = pnand %p651_p0, %p645_p11 }
  0x21   :  { %655 = shalt.err (!%p652_p1)
}
  0x22   :  { %28 = dma.hbm_to_vmem [thread:$0]  %s903_s1, 32, %s26_s12, [#allocation3]  }
  0x23   :  { %s708_s13 = smov [#allocation7]   ;;  %s656_s17 = scalar_lea.hbm %s907_s5, 256 }
  0x24   :  { %s48_s14 = sshll.u32 %s708_s13, 4  ;;  %p657_p2 = scmp.ne.s32.totalorder %s907_s5, %s656_s17  ;;  %s49_s14 = int_to_ptr.vmem [resolvable:$true] %s48_s14 }
  0x25   :  { %p660_p3 = scmp.lt.u32.totalorder %s656_s17, %s907_s5 }
  0x27   :  { %p662_p4 = pnand %p660_p3, %p657_p2 }
  0x29   :  { %665 = shalt.err (!%p662_p4)
}
  0x2a   :  { %s666_s22 = scalar_lea.vmem %s49_s14, 256  ;;  %p671_p6 = scmp.lt.s32.totalorder %s49_s14, %s49_s14 }
  0x2b   :  { %p667_p5 = scmp.ne.s32.totalorder %s49_s14, %s666_s22  ;;  %p672_p7 = scmp.lt.s32.totalorder %s666_s22, %s666_s22 }
  0x2d   :  { %p673_p8 = por %p672_p7, %p671_p6 }
  0x2f   :  { %p674_p9 = pnand %p673_p8, %p667_p5 }
  0x31   :  { %677 = shalt.err (!%p674_p9)
}
  0x32   :  { %s709_s1 = smov 128   ;;  %s710_s12 = smov 8  }
  0x33   :  { %54 = dma.hbm_to_vmem [thread:$0]  %s907_s5, 256, %s49_s14, [#allocation6], %s709_s1, %s709_s1, %s710_s12  }
  0x34   :  { %700 = dma.done.wait [#allocation3], 32  }
  0x35   :  { %701 = vsyncadd [#allocation3], 4294967264 }
  0x36   :  { %702 = dma.done.wait [#allocation6], 272  }
  0x37   :  { %703 = vsyncadd [#allocation6], 4294967024  ;;  %v711_v0 = vmov 0.0|0.0   ;;  %vm712_vm0 = vmmov 0   ;;  %v713_v1 = vmov 0.0   ;;  %v72_v2 = vld [vmem:[%s904_s2] sm:$0xff] }
  0x38   :  { %566 = vmatprep.subr.bf16.mxu0 %v711_v0  ;;  %534 = vmatprep.mubr.msk.f32.mxu0 %vm712_vm0, %v713_v1  ;;  %v73_v3 = vld [vmem:[%s904_s2 + $0x8] sm:$0xff]  ;;  %v74_v4 = vld [vmem:[%s904_s2 + $0x10] sm:$0xff]  ;;  %v75_v6 = vld [vmem:[%s904_s2 + $0x18] sm:$0xff]  ;;  %vm83_vm1 = vcmask 261120   ;;  %s714_s2 = smov 48   ;;  %s715_s13 = smov 16  }
  0x39   :  { %572 = vmatprep.subr.bf16.mxu1 %v711_v0  ;;  %541 = vmatprep.mubr.msk.f32.mxu1 %vm712_vm0, %v713_v1  ;;  %v567_v5 = vpack.c.bf16 %v73_v3, %v72_v2  ;;  %v570_v7 = vpack.c.bf16 %v75_v6, %v74_v4  ;;  %v829_v8 = vld [vmem:[%s902_s0] sm:$0x3]  ;;  %v501_v9 = vld [vmem:[#allocation5] ss:$0 sm:$0xff]  ;;  %s716_s14 = smov 32   ;;  %s717_s0 = smov 112  }
  0x3a   :  { %v836_v13 = vld [vmem:[#allocation2] sm:$0x3]  ;;  %s718_s15 = smov 80   ;;  %s719_s16 = smov 96   ;;  %vm158_vm2 = vcmask 123904   ;;  %v245_v50 = vld [vmem:[#allocation7] sm:$0xff] }
  0x3b   :  { %568 = vmatpush3.bf16.msra.mxu0 %v567_v5  ;;  %v246_v51 = vld [vmem:[#allocation7 + $0x8] sm:$0xff]  ;;  %v241_v5 = vld [vmem:[%s906_s4] sm:$0xff]  ;;  %vm247_vm3 = vcmask 130048  }
  0x3c   :  { %569 = vmatprep.subr.bf16.mxu0 %v711_v0  ;;  %v573_v52 = vpack.c.bf16 %v246_v51, %v245_v50  ;;  %v242_v6 = vld [vmem:[%s906_s4 + $0x8] sm:$0xff] }
  0x3e   :  { %574 = vmatpush3.bf16.msra.mxu1 %v573_v52 }
  0x3f   :  { %571 = vmatpush3.bf16.msra.mxu0 %v570_v7  ;;  %575 = vmatprep.subr.bf16.mxu1 %v711_v0 }
  0x40   :  { %581 = vmatprep.subr.bf16.mxu0 %v711_v0 }
  0x42   :  { %535 = vmatmul.mubr.msk.f32.vlgmr.msra.gmra.mrb[0].mxu0 %vm83_vm1, %v829_v8 }
  0x43   :  { %563 = vmatprep.mubr.msk.f32.mxu0 %vm712_vm0, %v713_v1 }
 0x115   :  { %v153_v10 = vpop.f32.mrb[0].mxu0 }
 0x116   :  { %v154_v11 = vadd.f32 %v501_v9, %v153_v10  ;;  %v536_v12 = vpop.f32.mrb[1].mxu0 }
 0x118   :  { %185 = vrot.lane.b32.xlu1 %v154_v11, %s714_s2  ;;  %163 = vrot.lane.b32.xlu0 %v154_v11, %s715_s13  ;;  %v157_v20 = vmul.f32 %v154_v11, %v836_v13 }
 0x11a   :  { %v159_v21 = vsel %vm158_vm2, %v157_v20, 0.0 }
 0x11c   :  { %174 = vrot.lane.b32.xlu0 %v154_v11, %s716_s14  ;;  %v576_v11 = vpack.c.bf16 %v242_v6, %v241_v5 }
 0x18a   :  { %v164_v14 = vpop.permute.xlu0 %163  ;;  %v186_v16 = vpop.permute.xlu1 %185 }
 0x18b   :  { %v166_v15 = vmul.f32 %v164_v14, %v836_v13  ;;  %v188_v18 = vmul.f32 %v186_v16, %v836_v13  ;;  %v244_v14 = vld [vmem:[%s906_s4 + $0x18] sm:$0xff]  ;;  %v400_v16 = vld [vmem:[%s909_s7] sm:$0xff] }
 0x18d   :  { %168 = vrot.lane.b32.xlu1 %v166_v15, %s717_s0 }
 0x18e   :  { %v175_v17 = vpop.permute.xlu0 %174 }
 0x18f   :  { %v177_v19 = vmul.f32 %v175_v17, %v836_v13  ;;  %v401_v17 = vld [vmem:[%s909_s7 + $0x8] sm:$0xff] }
 0x191   :  { %190 = vrot.lane.b32.xlu1 %v188_v18, %s718_s15  ;;  %179 = vrot.lane.b32.xlu0 %v177_v19, %s719_s16  ;;  %v582_v18 = vpack.c.bf16 %v401_v17, %v400_v16 }
 0x193   :  { %583 = vmatpush3.bf16.msra.mxu0 %v582_v18 }
 0x194   :  { %584 = vmatprep.subr.bf16.mxu0 %v711_v0 }
 0x1b0   :  { %160 = vadd.xlane.f32.xlu0 %v159_v21 }
 0x1ff   :  { %v169_v22 = vpop.permute.xlu1 %168 }
 0x200   :  { %v171_v23 = vsel %vm158_vm2, %v169_v22, 0.0 }
 0x201   :  { %172 = vadd.xlane.f32.xlu1 %v171_v23  ;;  %v505_v23 = vld [vmem:[%s908_s6] ss:$0 sm:$0xff] }
 0x203   :  { %v180_v24 = vpop.permute.xlu0 %179  ;;  %v191_v26 = vpop.permute.xlu1 %190 }
 0x204   :  { %v182_v25 = vsel %vm158_vm2, %v180_v24, 0.0  ;;  %v193_v27 = vsel %vm158_vm2, %v191_v26, 0.0 }
 0x205   :  { %183 = vadd.xlane.f32.xlu0 %v182_v25 }
 0x209   :  { %194 = vadd.xlane.f32.xlu0 %v193_v27  ;;  %v506_v27 = vld [vmem:[%s910_s8] ss:$0 sm:$0xff] }
 0x23d   :  { %v161_v28 = vpop.xlane.xlu0 %160 }
 0x28e   :  { %v173_v29 = vpop.xlane.xlu1 %172 }
 0x28f   :  { %v196_v31 = vmax.f32 %v161_v28, %v173_v29 }
 0x292   :  { %v184_v30 = vpop.xlane.xlu0 %183 }
 0x293   :  { %v197_v32 = vmax.f32 %v196_v31, %v184_v30 }
 0x296   :  { %v195_v33 = vpop.xlane.xlu0 %194 }
 0x297   :  { %v198_v34 = vmax.f32 %v197_v32, %v195_v33 }
 0x299   :  { %v199_v35 = vsub.f32 %v161_v28, %v198_v34  ;;  %v202_v36 = vsub.f32 %v173_v29, %v198_v34  ;;  %v205_v37 = vsub.f32 %v184_v30, %v198_v34  ;;  %v208_v38 = vsub.f32 %v195_v33, %v198_v34 }
 0x29b   :  { %v200_v39 = vmul.f32 1.442695, %v199_v35  ;;  %v203_v40 = vmul.f32 1.442695, %v202_v36  ;;  %v206_v41 = vmul.f32 1.442695, %v205_v37 }
 0x29c   :  { %v209_v42 = vmul.f32 1.442695, %v208_v38 }
 0x29d   :  { %602 = vpow2.f32 %v200_v39 }
 0x29e   :  { %604 = vpow2.f32 %v203_v40 }
 0x29f   :  { %606 = vpow2.f32 %v206_v41 }
 0x2a0   :  { %608 = vpow2.f32 %v209_v42 }
 0x2a7   :  { %v603_v43 = vpop.eup %602 }
 0x2a8   :  { %v605_v44 = vpop.eup %604 }
 0x2a9   :  { %v211_v45 = vadd.f32 %v605_v44, %v603_v43  ;;  %v607_v46 = vpop.eup %606 }
 0x2aa   :  { %v609_v48 = vpop.eup %608 }
 0x2ab   :  { %v212_v47 = vadd.f32 %v607_v46, %v211_v45 }
 0x2ad   :  { %v213_v49 = vadd.f32 %v609_v48, %v212_v47 }
 0x2af   :  { %610 = vrcp.f32 %v213_v49 }
 0x2b9   :  { %v611_v53 = vpop.eup %610 }
 0x2ba   :  { %v215_v54 = vmul.f32 %v611_v53, %v213_v49 }
 0x2bc   :  { %v216_v55 = vsub.f32 2.0, %v215_v54 }
 0x2be   :  { %v217_v56 = vmul.f32 %v611_v53, %v216_v55 }
 0x2c0   :  { %v227_v57 = vmul.f32 %v607_v46, %v217_v56  ;;  %v220_v58 = vmul.f32 %v605_v44, %v217_v56  ;;  %v218_v59 = vmul.f32 %v603_v43, %v217_v56  ;;  %v234_v62 = vmul.f32 %v609_v48, %v217_v56 }
 0x2c2   :  { %v228_v60 = vmul.f32 %v227_v57, %v836_v13  ;;  %v221_v61 = vmul.f32 %v220_v58, %v836_v13  ;;  %v235_v63 = vmul.f32 %v234_v62, %v836_v13  ;;  %v219_v2 = vmul.f32 %v218_v59, %v836_v13  ;;  %v243_v13 = vld [vmem:[%s906_s4 + $0x10] sm:$0xff] }
 0x2c3   :  { %v579_v15 = vpack.c.bf16 %v244_v14, %v243_v13 }
 0x2c4   :  { %230 = vrot.lane.b32.xlu0 %v228_v60, %s719_s16  ;;  %223 = vrot.lane.b32.xlu1 %v221_v61, %s717_s0 }
 0x2c8   :  { %237 = vrot.lane.b32.xlu1 %v235_v63, %s718_s15 }
 0x336   :  { %v224_v3 = vpop.permute.xlu1 %223  ;;  %v231_v7 = vpop.permute.xlu0 %230 }
 0x337   :  { %v226_v4 = vadd.f32 %v224_v3, %v219_v2 }
 0x339   :  { %v233_v9 = vadd.f32 %v231_v7, %v226_v4 }
 0x33a   :  { %v238_v10 = vpop.permute.xlu1 %237 }
 0x33b   :  { %v240_v12 = vadd.f32 %v238_v10, %v233_v9 }
 0x33d   :  { %542 = vmatmul.mubr.msk.f32.vlgmr.msra.gmra.mrb[0].mxu1 %vm247_vm3, %v240_v12 }
 0x33e   :  { %577 = vmatpush3.bf16.msra.mxu1 %v576_v11  ;;  %552 = vmatprep.mubr.msk.f32.mxu1 %vm712_vm0, %v713_v1  ;;  %v402_v1 = vld [vmem:[%s909_s7 + $0x10] sm:$0xff] }
 0x33f   :  { %578 = vmatprep.subr.bf16.mxu1 %v711_v0 }
 0x342   :  { %580 = vmatpush3.bf16.msra.mxu1 %v579_v15 }
 0x345   :  { %553 = vmatmul.mubr.msk.f32.vlgmr.msra.gmra.mrb[2].mxu1 %vm83_vm1, %v829_v8  ;;  %v403_v8 = vld [vmem:[%s909_s7 + $0x18] sm:$0xff]  ;;  %s720_s7 = smov [#allocation8]  }
 0x346   :  { %v585_v19 = vpack.c.bf16 %v403_v8, %v402_v1  ;;  %s491_s10 = sshll.u32 %s720_s7, 4  ;;  %s492_s10 = int_to_ptr.vmem [resolvable:$true] %s491_s10 }
 0x347   :  { %s678_s2 = scalar_lea.vmem %s492_s10, 32  ;;  %p683_p11 = scmp.lt.s32.totalorder %s492_s10, %s492_s10 }
 0x348   :  { %586 = vmatpush3.bf16.msra.mxu0 %v585_v19  ;;  %p679_p10 = scmp.ne.s32.totalorder %s492_s10, %s678_s2  ;;  %p684_p12 = scmp.lt.s32.totalorder %s678_s2, %s678_s2 }
 0x34a   :  { %p685_p13 = por %p684_p12, %p683_p11 }
 0x34c   :  { %p686_p0 = pnand %p685_p13, %p679_p10 }
 0x410   :  { %v317_v20 = vpop.f32.mrb[0].mxu1 }
 0x411   :  { %v543_v21 = vpop.f32.mrb[1].mxu1 }
 0x418   :  { %v387_v22 = vpop.f32.mrb[2].mxu1 }
 0x419   :  { %v388_v24 = vadd.f32 %v387_v22, %v317_v20  ;;  %v554_v25 = vpop.f32.mrb[3].mxu1 }
 0x41b   :  { %v398_v0 = vadd.f32 %v505_v23, %v388_v24 }
 0x41d   :  { %v399_v26 = vmax.f32 %v398_v0, 0.0 }
 0x41f   :  { %564 = vmatmul.mubr.msk.f32.vlgmr.msra.gmra.mrb[2].mxu0 %vm83_vm1, %v399_v26 }
 0x4f2   :  { %v480_v28 = vpop.f32.mrb[2].mxu0 }
 0x4f3   :  { %v481_v29 = vadd.f32 %v506_v27, %v480_v28  ;;  %v565_v30 = vpop.f32.mrb[3].mxu0 }
 0x4f5   :  { %484 = vst [vmem:[#allocation8] sm:$0x3] %v481_v29 }
 0x4f6   :  { %689 = shalt.err (!%p686_p0)
}
 0x4f7   :  { %s690_s14 = scalar_lea.hbm %s911_s9, 32 }
 0x4f8   :  { %p691_p1 = scmp.ne.s32.totalorder %s911_s9, %s690_s14  ;;  %p694_p2 = scmp.lt.u32.totalorder %s690_s14, %s911_s9 }
 0x4fa   :  { %p696_p3 = pnand %p694_p2, %p691_p1 }
 0x4fc   :  { %699 = shalt.err (!%p696_p3)
}
 0x4fd   :  { %494 = dma.vmem_to_hbm [thread:$0]  %s492_s10, 32, %s911_s9, [#allocation4]  }
 0x4fe   :  { %704 = dma.done.wait [#allocation4], 32  }
 0x4ff   :  { %705 = vsyncadd [#allocation4], 4294967264 }
 0x500   :  { %498 = vsyncpa [#allocation3], 1 }
 0x501   :  { %499 = vsyncpa [#allocation6], 1 }
 0x502   :  { %500 = vsyncpa [#allocation4], 1 }

</bundles_post_ra>
